<compile_context>
chip_gen: v7x
topology: tpu7x:2x2x1
jax: 0.10.0
libtpu: 0.0.40
codegen_flags: <defaults>
</compile_context>

<pallas_src>
import jax
import jax.numpy as jnp
from jax import lax
from jax.experimental import pallas as pl
from jax.experimental.pallas import tpu as pltpu

# ---- problem sizes (small, consistent with a decoder block forward) ----
B, S, D = 2, 8, 32          # batch, sequence, hidden
NH, HD = 4, 8               # heads, head_dim (NH * HD == D)
H = 4 * D                   # MLP hidden
N = B * S                   # flattened rows fed to every matmul
EPS = 1e-5
NEG_INF = -1e30


def _layernorm(x, g, b):
    mu = jnp.mean(x, axis=-1, keepdims=True)
    var = jnp.mean(jnp.square(x - mu), axis=-1, keepdims=True)
    return (x - mu) * lax.rsqrt(var + EPS) * g + b


def _gelu_tanh(x):
    # tanh-approximate GELU (EUP-friendly; the injected MLP's activation is unspecified)
    c = 0.7978845608028654  # sqrt(2/pi)
    return 0.5 * x * (1.0 + jnp.tanh(c * (x + 0.044715 * x * x * x)))


def decoder_block_kernel(x_ref, mask_ref, ln1_g_ref, ln1_b_ref, wqkv_ref, bqkv_ref,
                         wo_ref, bo_ref, ln2_g_ref, ln2_b_ref,
                         w1_ref, b1_ref, w2_ref, b2_ref, out_ref):
    x = x_ref[...].astype(jnp.float32)            # (B*S, D): all rows in one shot
    mask_add = mask_ref[...]                      # (B*S, B*S) additive block-causal mask

    # ---------------- attention branch (pre-norm) ----------------
    h = _layernorm(x, ln1_g_ref[...], ln1_b_ref[...])
    qkv = jnp.dot(h, wqkv_ref[...], preferred_element_type=jnp.float32) + bqkv_ref[...]
    q = qkv[:, :D] * (1.0 / (HD ** 0.5))          # pre-scale q once (not every (N,N) score)
    k = qkv[:, D:2 * D]
    v = qkv[:, 2 * D:]
    wo = wo_ref[...]

    # Per-head loop with the output projection FUSED into the accumulation:
    # no concat of head outputs, no separate (N,D)@(D,D) matmul afterwards.
    attn = jnp.zeros((N, D), jnp.float32)
    for hh in range(NH):                          # static unroll over heads
        lo, hi = hh * HD, (hh + 1) * HD
        qh, kh, vh = q[:, lo:hi], k[:, lo:hi], v[:, lo:hi]
        s = lax.dot_general(qh, kh, (((1,), (1,)), ((), ())),
                            preferred_element_type=jnp.float32) + mask_add
        s = s - jnp.max(s, axis=-1, keepdims=True)
        p = jnp.exp(s)
        p = p * pl.reciprocal(jnp.sum(p, axis=-1, keepdims=True), approx=True)
        oh = jnp.dot(p, vh, preferred_element_type=jnp.float32)            # (N, HD)
        attn = attn + jnp.dot(oh, wo[lo:hi, :], preferred_element_type=jnp.float32)
    x = x + attn + bo_ref[...]                    # residual 1 (+ out-proj bias once)

    # ---------------- MLP branch (pre-norm) ----------------
    h2 = _layernorm(x, ln2_g_ref[...], ln2_b_ref[...])
    m = jnp.dot(h2, w1_ref[...], preferred_element_type=jnp.float32) + b1_ref[...]
    m = _gelu_tanh(m)
    m = jnp.dot(m, w2_ref[...], preferred_element_type=jnp.float32) + b2_ref[...]
    out_ref[...] = (x + m).astype(out_ref.dtype)  # residual 2


def decoder_block(x, params):
    param_order = ["ln1_g", "ln1_b", "wqkv", "bqkv", "wo", "bo",
                   "ln2_g", "ln2_b", "w1", "b1", "w2", "b2"]
    plist = [params[k] for k in param_order]

    # Flatten (B, S, D) -> (B*S, D) in the wrapper (free) so a single kernel invocation
    # processes every row; the batch structure is preserved by the block-diagonal mask.
    x2d = x.reshape(N, D)

    # Precomputed additive mask: allowed iff same batch element AND causal.
    row = lax.broadcasted_iota(jnp.int32, (N, N), 0)
    col = lax.broadcasted_iota(jnp.int32, (N, N), 1)
    ok = jnp.logical_and(col <= row, (row // S) == (col // S))
    mask_add = jnp.where(ok, 0.0, NEG_INF).astype(jnp.float32)

    in_specs = [pl.BlockSpec((N, D), lambda i: (0, 0)),
                pl.BlockSpec((N, N), lambda i: (0, 0))]
    for p in plist:
        # full-array blocks for all parameters (small and batch-invariant)
        in_specs.append(pl.BlockSpec(p.shape, lambda i: (0, 0)))

    out2d = pl.pallas_call(
        decoder_block_kernel,
        out_shape=jax.ShapeDtypeStruct((N, D), x.dtype),
        grid_spec=pltpu.PrefetchScalarGridSpec(
            num_scalar_prefetch=0,
            grid=(1,),                           # single step: no per-step grid overhead
            in_specs=in_specs,
            out_specs=pl.BlockSpec((N, D), lambda i: (0, 0)),
        ),
        compiler_params=pltpu.CompilerParams(
            dimension_semantics=("arbitrary",)),
    )(x2d, mask_add, *plist)
    return out2d.reshape(B, S, D)


def decoder_block_reference(x, p):
    """Pure-JAX reference with identical math, for a correctness check."""
    def ln(v, g, b):
        mu = jnp.mean(v, -1, keepdims=True)
        var = jnp.mean((v - mu) ** 2, -1, keepdims=True)
        return (v - mu) * lax.rsqrt(var + EPS) * g + b

    h = ln(x, p["ln1_g"], p["ln1_b"])
    qkv = h @ p["wqkv"] + p["bqkv"]
    q, k, v = qkv[..., :D], qkv[..., D:2 * D], qkv[..., 2 * D:]
    q = q.reshape(B, S, NH, HD).transpose(0, 2, 1, 3)
    k = k.reshape(B, S, NH, HD).transpose(0, 2, 1, 3)
    v = v.reshape(B, S, NH, HD).transpose(0, 2, 1, 3)
    s = jnp.einsum("bhqd,bhkd->bhqk", q, k) / (HD ** 0.5)
    causal = jnp.tril(jnp.ones((S, S), bool))
    s = jnp.where(causal, s, NEG_INF)
    pmat = jax.nn.softmax(s, axis=-1)
    a = jnp.einsum("bhqk,bhkd->bhqd", pmat, v).transpose(0, 2, 1, 3).reshape(B, S, D)
    x = x + (a @ p["wo"] + p["bo"])
    h2 = ln(x, p["ln2_g"], p["ln2_b"])
    c = 0.7978845608028654
    m = h2 @ p["w1"] + p["b1"]
    m = 0.5 * m * (1.0 + jnp.tanh(c * (m + 0.044715 * m ** 3)))
    return x + (m @ p["w2"] + p["b2"])


def init_params(key):
    ks = jax.random.split(key, 8)
    f32 = jnp.float32
    return {
        "ln1_g": jnp.ones((1, D), f32),
        "ln1_b": jnp.zeros((1, D), f32),
        "wqkv": 0.02 * jax.random.normal(ks[0], (D, 3 * D), f32),
        "bqkv": 0.01 * jax.random.normal(ks[1], (1, 3 * D), f32),
        "wo": 0.02 * jax.random.normal(ks[2], (D, D), f32),
        "bo": 0.01 * jax.random.normal(ks[3], (1, D), f32),
        "ln2_g": jnp.ones((1, D), f32),
        "ln2_b": jnp.zeros((1, D), f32),
        "w1": 0.02 * jax.random.normal(ks[4], (D, H), f32),
        "b1": 0.01 * jax.random.normal(ks[5], (1, H), f32),
        "w2": 0.02 * jax.random.normal(ks[6], (H, D), f32),
        "b2": 0.01 * jax.random.normal(ks[7], (1, D), f32),
    }


if __name__ == "__main__":
    key = jax.random.PRNGKey(0)
    kx, kp = jax.random.split(key)
    x = jax.random.normal(kx, (B, S, D), jnp.float32)
    params = init_params(kp)

    out = decoder_block(x, params)
    out = jax.block_until_ready(out)

    ref = decoder_block_reference(x, params)
    assert out.shape == (B, S, D)
    # slightly looser tolerance than exact-division softmax: the kernel uses the EUP
    # approximate reciprocal for the softmax denominator (pl.reciprocal(..., approx=True)).
    err = float(jnp.max(jnp.abs(out - ref)))
    assert jnp.allclose(out, ref, rtol=5e-4, atol=5e-4), err

    print("KERNEL_OK")
</pallas_src>

<mosaic_0001>
module attributes {stable_mosaic.version = 11 : i64} {
  func.func @decoder_block_kernel(%arg0: i32, %arg1: memref<16x32xf32, #tpu.memory_space<vmem>>, %arg2: memref<16x16xf32, #tpu.memory_space<vmem>>, %arg3: memref<1x32xf32, #tpu.memory_space<vmem>>, %arg4: memref<1x32xf32, #tpu.memory_space<vmem>>, %arg5: memref<32x96xf32, #tpu.memory_space<vmem>>, %arg6: memref<1x96xf32, #tpu.memory_space<vmem>>, %arg7: memref<32x32xf32, #tpu.memory_space<vmem>>, %arg8: memref<1x32xf32, #tpu.memory_space<vmem>>, %arg9: memref<1x32xf32, #tpu.memory_space<vmem>>, %arg10: memref<1x32xf32, #tpu.memory_space<vmem>>, %arg11: memref<32x128xf32, #tpu.memory_space<vmem>>, %arg12: memref<1x128xf32, #tpu.memory_space<vmem>>, %arg13: memref<128x32xf32, #tpu.memory_space<vmem>>, %arg14: memref<1x32xf32, #tpu.memory_space<vmem>>, %arg15: memref<16x32xf32, #tpu.memory_space<vmem>>) attributes {dimension_semantics = [#tpu.dimension_semantics<arbitrary>], iteration_bounds = array<i64: 1>, scalar_prefetch = 0 : i64, scratch_operands = 0 : i64, tpu.core_type = #tpu.core_type<tc>, window_params = [{pipeline_mode = #tpu.pipeline_mode<synchronous>, transform_indices = @transform_0, window_bounds = array<i64: 16, 32>}, {pipeline_mode = #tpu.pipeline_mode<synchronous>, transform_indices = @transform_1, window_bounds = array<i64: 16, 16>}, {pipeline_mode = #tpu.pipeline_mode<synchronous>, transform_indices = @transform_2, window_bounds = array<i64: 1, 32>}, {pipeline_mode = #tpu.pipeline_mode<synchronous>, transform_indices = @transform_3, window_bounds = array<i64: 1, 32>}, {pipeline_mode = #tpu.pipeline_mode<synchronous>, transform_indices = @transform_4, window_bounds = array<i64: 32, 96>}, {pipeline_mode = #tpu.pipeline_mode<synchronous>, transform_indices = @transform_5, window_bounds = array<i64: 1, 96>}, {pipeline_mode = #tpu.pipeline_mode<synchronous>, transform_indices = @transform_6, window_bounds = array<i64: 32, 32>}, {pipeline_mode = #tpu.pipeline_mode<synchronous>, transform_indices = @transform_7, window_bounds = array<i64: 1, 32>}, {pipeline_mode = #tpu.pipeline_mode<synchronous>, transform_indices = @transform_8, window_bounds = array<i64: 1, 32>}, {pipeline_mode = #tpu.pipeline_mode<synchronous>, transform_indices = @transform_9, window_bounds = array<i64: 1, 32>}, {pipeline_mode = #tpu.pipeline_mode<synchronous>, transform_indices = @transform_10, window_bounds = array<i64: 32, 128>}, {pipeline_mode = #tpu.pipeline_mode<synchronous>, transform_indices = @transform_11, window_bounds = array<i64: 1, 128>}, {pipeline_mode = #tpu.pipeline_mode<synchronous>, transform_indices = @transform_12, window_bounds = array<i64: 128, 32>}, {pipeline_mode = #tpu.pipeline_mode<synchronous>, transform_indices = @transform_13, window_bounds = array<i64: 1, 32>}, {pipeline_mode = #tpu.pipeline_mode<synchronous>, transform_indices = @transform_14, window_bounds = array<i64: 16, 32>}]} {
    %c0 = arith.constant 0 : index
    %c0_0 = arith.constant 0 : index
    %0 = vector.load %arg1[%c0, %c0_0] : memref<16x32xf32, #tpu.memory_space<vmem>>, vector<16x32xf32>
    %c0_1 = arith.constant 0 : index
    %c0_2 = arith.constant 0 : index
    %1 = vector.load %arg2[%c0_1, %c0_2] : memref<16x16xf32, #tpu.memory_space<vmem>>, vector<16x16xf32>
    %c0_3 = arith.constant 0 : index
    %c0_4 = arith.constant 0 : index
    %2 = vector.load %arg3[%c0_3, %c0_4] : memref<1x32xf32, #tpu.memory_space<vmem>>, vector<1x32xf32>
    %c0_5 = arith.constant 0 : index
    %c0_6 = arith.constant 0 : index
    %3 = vector.load %arg4[%c0_5, %c0_6] : memref<1x32xf32, #tpu.memory_space<vmem>>, vector<1x32xf32>
    %cst = arith.constant dense<0.000000e+00> : vector<16xf32>
    %4 = vector.multi_reduction <add>, %0, %cst [1] : vector<16x32xf32> to vector<16xf32>
    %5 = vector.shape_cast %4 : vector<16xf32> to vector<16x1xf32>
    %cst_7 = arith.constant 3.200000e+01 : f32
    %6 = vector.broadcast %cst_7 : f32 to vector<16x1xf32>
    %7 = arith.divf %5, %6 : vector<16x1xf32>
    %8 = vector.broadcast %7 : vector<16x1xf32> to vector<16x32xf32>
    %9 = arith.subf %0, %8 : vector<16x32xf32>
    %10 = arith.mulf %9, %9 : vector<16x32xf32>
    %cst_8 = arith.constant dense<0.000000e+00> : vector<16xf32>
    %11 = vector.multi_reduction <add>, %10, %cst_8 [1] : vector<16x32xf32> to vector<16xf32>
    %12 = vector.shape_cast %11 : vector<16xf32> to vector<16x1xf32>
    %cst_9 = arith.constant 3.200000e+01 : f32
    %13 = vector.broadcast %cst_9 : f32 to vector<16x1xf32>
    %14 = arith.divf %12, %13 : vector<16x1xf32>
    %15 = vector.broadcast %7 : vector<16x1xf32> to vector<16x32xf32>
    %16 = arith.subf %0, %15 : vector<16x32xf32>
    %cst_10 = arith.constant 9.99999974E-6 : f32
    %17 = vector.broadcast %cst_10 : f32 to vector<16x1xf32>
    %18 = arith.addf %14, %17 : vector<16x1xf32>
    %19 = math.rsqrt %18 : vector<16x1xf32>
    %20 = vector.broadcast %19 : vector<16x1xf32> to vector<16x32xf32>
    %21 = arith.mulf %16, %20 : vector<16x32xf32>
    %22 = vector.broadcast %2 : vector<1x32xf32> to vector<16x32xf32>
    %23 = arith.mulf %21, %22 : vector<16x32xf32>
    %24 = vector.broadcast %3 : vector<1x32xf32> to vector<16x32xf32>
    %25 = arith.addf %23, %24 : vector<16x32xf32>
    %c0_11 = arith.constant 0 : index
    %c0_12 = arith.constant 0 : index
    %26 = vector.load %arg5[%c0_11, %c0_12] : memref<32x96xf32, #tpu.memory_space<vmem>>, vector<32x96xf32>
    %cst_13 = arith.constant dense<0.000000e+00> : vector<16x96xf32>
    %27 = tpu.matmul %25, %26, %cst_13 {dimension_numbers = #tpu.dot_dimension_numbers<[1], [0], [0], [1], [0, 0, 1, 1], [], []>} : vector<16x32xf32>, vector<32x96xf32>, vector<16x96xf32> -> vector<16x96xf32>
    %c0_14 = arith.constant 0 : index
    %c0_15 = arith.constant 0 : index
    %28 = vector.load %arg6[%c0_14, %c0_15] : memref<1x96xf32, #tpu.memory_space<vmem>>, vector<1x96xf32>
    %29 = vector.broadcast %28 : vector<1x96xf32> to vector<16x96xf32>
    %30 = arith.addf %27, %29 : vector<16x96xf32>
    %31 = vector.extract_strided_slice %30 {offsets = [0, 0], sizes = [16, 32], strides = [1, 1]} : vector<16x96xf32> to vector<16x32xf32>
    %cst_16 = arith.constant 0.353553385 : f32
    %32 = vector.broadcast %cst_16 : f32 to vector<16x32xf32>
    %33 = arith.mulf %31, %32 : vector<16x32xf32>
    %34 = vector.extract_strided_slice %30 {offsets = [0, 32], sizes = [16, 32], strides = [1, 1]} : vector<16x96xf32> to vector<16x32xf32>
    %35 = vector.extract_strided_slice %30 {offsets = [0, 64], sizes = [16, 32], strides = [1, 1]} : vector<16x96xf32> to vector<16x32xf32>
    %c0_17 = arith.constant 0 : index
    %c0_18 = arith.constant 0 : index
    %36 = vector.load %arg7[%c0_17, %c0_18] : memref<32x32xf32, #tpu.memory_space<vmem>>, vector<32x32xf32>
    %cst_19 = arith.constant 0.000000e+00 : f32
    %37 = vector.broadcast %cst_19 : f32 to vector<16x32xf32>
    %38 = vector.extract_strided_slice %33 {offsets = [0, 0], sizes = [16, 8], strides = [1, 1]} : vector<16x32xf32> to vector<16x8xf32>
    %39 = vector.extract_strided_slice %34 {offsets = [0, 0], sizes = [16, 8], strides = [1, 1]} : vector<16x32xf32> to vector<16x8xf32>
    %40 = vector.extract_strided_slice %35 {offsets = [0, 0], sizes = [16, 8], strides = [1, 1]} : vector<16x32xf32> to vector<16x8xf32>
    %cst_20 = arith.constant dense<0.000000e+00> : vector<16x16xf32>
    %41 = tpu.matmul %38, %39, %cst_20 {dimension_numbers = #tpu.dot_dimension_numbers<[1], [1], [0], [0], [0, 0, 1, 0], [], []>} : vector<16x8xf32>, vector<16x8xf32>, vector<16x16xf32> -> vector<16x16xf32>
    %42 = arith.addf %41, %1 : vector<16x16xf32>
    %cst_21 = arith.constant dense<0xFF800000> : vector<16xf32>
    %43 = vector.multi_reduction <maximumf>, %42, %cst_21 [1] : vector<16x16xf32> to vector<16xf32>
    %44 = vector.shape_cast %43 : vector<16xf32> to vector<16x1xf32>
    %45 = vector.broadcast %44 : vector<16x1xf32> to vector<16x16xf32>
    %46 = arith.subf %42, %45 : vector<16x16xf32>
    %47 = math.exp %46 : vector<16x16xf32>
    %cst_22 = arith.constant dense<0.000000e+00> : vector<16xf32>
    %48 = vector.multi_reduction <add>, %47, %cst_22 [1] : vector<16x16xf32> to vector<16xf32>
    %49 = vector.shape_cast %48 : vector<16xf32> to vector<16x1xf32>
    %50 = tpu.reciprocal %49 {approx = true} : vector<16x1xf32> -> vector<16x1xf32>
    %51 = vector.broadcast %50 : vector<16x1xf32> to vector<16x16xf32>
    %52 = arith.mulf %47, %51 : vector<16x16xf32>
    %cst_23 = arith.constant dense<0.000000e+00> : vector<16x8xf32>
    %53 = tpu.matmul %52, %40, %cst_23 {dimension_numbers = #tpu.dot_dimension_numbers<[1], [0], [0], [1], [0, 0, 1, 1], [], []>} : vector<16x16xf32>, vector<16x8xf32>, vector<16x8xf32> -> vector<16x8xf32>
    %54 = vector.extract_strided_slice %36 {offsets = [0, 0], sizes = [8, 32], strides = [1, 1]} : vector<32x32xf32> to vector<8x32xf32>
    %cst_24 = arith.constant dense<0.000000e+00> : vector<16x32xf32>
    %55 = tpu.matmul %53, %54, %cst_24 {dimension_numbers = #tpu.dot_dimension_numbers<[1], [0], [0], [1], [0, 0, 1, 1], [], []>} : vector<16x8xf32>, vector<8x32xf32>, vector<16x32xf32> -> vector<16x32xf32>
    %56 = arith.addf %37, %55 : vector<16x32xf32>
    %57 = vector.extract_strided_slice %33 {offsets = [0, 8], sizes = [16, 8], strides = [1, 1]} : vector<16x32xf32> to vector<16x8xf32>
    %58 = vector.extract_strided_slice %34 {offsets = [0, 8], sizes = [16, 8], strides = [1, 1]} : vector<16x32xf32> to vector<16x8xf32>
    %59 = vector.extract_strided_slice %35 {offsets = [0, 8], sizes = [16, 8], strides = [1, 1]} : vector<16x32xf32> to vector<16x8xf32>
    %cst_25 = arith.constant dense<0.000000e+00> : vector<16x16xf32>
    %60 = tpu.matmul %57, %58, %cst_25 {dimension_numbers = #tpu.dot_dimension_numbers<[1], [1], [0], [0], [0, 0, 1, 0], [], []>} : vector<16x8xf32>, vector<16x8xf32>, vector<16x16xf32> -> vector<16x16xf32>
    %61 = arith.addf %60, %1 : vector<16x16xf32>
    %cst_26 = arith.constant dense<0xFF800000> : vector<16xf32>
    %62 = vector.multi_reduction <maximumf>, %61, %cst_26 [1] : vector<16x16xf32> to vector<16xf32>
    %63 = vector.shape_cast %62 : vector<16xf32> to vector<16x1xf32>
    %64 = vector.broadcast %63 : vector<16x1xf32> to vector<16x16xf32>
    %65 = arith.subf %61, %64 : vector<16x16xf32>
    %66 = math.exp %65 : vector<16x16xf32>
    %cst_27 = arith.constant dense<0.000000e+00> : vector<16xf32>
    %67 = vector.multi_reduction <add>, %66, %cst_27 [1] : vector<16x16xf32> to vector<16xf32>
    %68 = vector.shape_cast %67 : vector<16xf32> to vector<16x1xf32>
    %69 = tpu.reciprocal %68 {approx = true} : vector<16x1xf32> -> vector<16x1xf32>
    %70 = vector.broadcast %69 : vector<16x1xf32> to vector<16x16xf32>
    %71 = arith.mulf %66, %70 : vector<16x16xf32>
    %cst_28 = arith.constant dense<0.000000e+00> : vector<16x8xf32>
    %72 = tpu.matmul %71, %59, %cst_28 {dimension_numbers = #tpu.dot_dimension_numbers<[1], [0], [0], [1], [0, 0, 1, 1], [], []>} : vector<16x16xf32>, vector<16x8xf32>, vector<16x8xf32> -> vector<16x8xf32>
    %73 = vector.extract_strided_slice %36 {offsets = [8, 0], sizes = [8, 32], strides = [1, 1]} : vector<32x32xf32> to vector<8x32xf32>
    %cst_29 = arith.constant dense<0.000000e+00> : vector<16x32xf32>
    %74 = tpu.matmul %72, %73, %cst_29 {dimension_numbers = #tpu.dot_dimension_numbers<[1], [0], [0], [1], [0, 0, 1, 1], [], []>} : vector<16x8xf32>, vector<8x32xf32>, vector<16x32xf32> -> vector<16x32xf32>
    %75 = arith.addf %56, %74 : vector<16x32xf32>
    %76 = vector.extract_strided_slice %33 {offsets = [0, 16], sizes = [16, 8], strides = [1, 1]} : vector<16x32xf32> to vector<16x8xf32>
    %77 = vector.extract_strided_slice %34 {offsets = [0, 16], sizes = [16, 8], strides = [1, 1]} : vector<16x32xf32> to vector<16x8xf32>
    %78 = vector.extract_strided_slice %35 {offsets = [0, 16], sizes = [16, 8], strides = [1, 1]} : vector<16x32xf32> to vector<16x8xf32>
    %cst_30 = arith.constant dense<0.000000e+00> : vector<16x16xf32>
    %79 = tpu.matmul %76, %77, %cst_30 {dimension_numbers = #tpu.dot_dimension_numbers<[1], [1], [0], [0], [0, 0, 1, 0], [], []>} : vector<16x8xf32>, vector<16x8xf32>, vector<16x16xf32> -> vector<16x16xf32>
    %80 = arith.addf %79, %1 : vector<16x16xf32>
    %cst_31 = arith.constant dense<0xFF800000> : vector<16xf32>
    %81 = vector.multi_reduction <maximumf>, %80, %cst_31 [1] : vector<16x16xf32> to vector<16xf32>
    %82 = vector.shape_cast %81 : vector<16xf32> to vector<16x1xf32>
    %83 = vector.broadcast %82 : vector<16x1xf32> to vector<16x16xf32>
    %84 = arith.subf %80, %83 : vector<16x16xf32>
    %85 = math.exp %84 : vector<16x16xf32>
    %cst_32 = arith.constant dense<0.000000e+00> : vector<16xf32>
    %86 = vector.multi_reduction <add>, %85, %cst_32 [1] : vector<16x16xf32> to vector<16xf32>
    %87 = vector.shape_cast %86 : vector<16xf32> to vector<16x1xf32>
    %88 = tpu.reciprocal %87 {approx = true} : vector<16x1xf32> -> vector<16x1xf32>
    %89 = vector.broadcast %88 : vector<16x1xf32> to vector<16x16xf32>
    %90 = arith.mulf %85, %89 : vector<16x16xf32>
    %cst_33 = arith.constant dense<0.000000e+00> : vector<16x8xf32>
    %91 = tpu.matmul %90, %78, %cst_33 {dimension_numbers = #tpu.dot_dimension_numbers<[1], [0], [0], [1], [0, 0, 1, 1], [], []>} : vector<16x16xf32>, vector<16x8xf32>, vector<16x8xf32> -> vector<16x8xf32>
    %92 = vector.extract_strided_slice %36 {offsets = [16, 0], sizes = [8, 32], strides = [1, 1]} : vector<32x32xf32> to vector<8x32xf32>
    %cst_34 = arith.constant dense<0.000000e+00> : vector<16x32xf32>
    %93 = tpu.matmul %91, %92, %cst_34 {dimension_numbers = #tpu.dot_dimension_numbers<[1], [0], [0], [1], [0, 0, 1, 1], [], []>} : vector<16x8xf32>, vector<8x32xf32>, vector<16x32xf32> -> vector<16x32xf32>
    %94 = arith.addf %75, %93 : vector<16x32xf32>
    %95 = vector.extract_strided_slice %33 {offsets = [0, 24], sizes = [16, 8], strides = [1, 1]} : vector<16x32xf32> to vector<16x8xf32>
    %96 = vector.extract_strided_slice %34 {offsets = [0, 24], sizes = [16, 8], strides = [1, 1]} : vector<16x32xf32> to vector<16x8xf32>
    %97 = vector.extract_strided_slice %35 {offsets = [0, 24], sizes = [16, 8], strides = [1, 1]} : vector<16x32xf32> to vector<16x8xf32>
    %cst_35 = arith.constant dense<0.000000e+00> : vector<16x16xf32>
    %98 = tpu.matmul %95, %96, %cst_35 {dimension_numbers = #tpu.dot_dimension_numbers<[1], [1], [0], [0], [0, 0, 1, 0], [], []>} : vector<16x8xf32>, vector<16x8xf32>, vector<16x16xf32> -> vector<16x16xf32>
    %99 = arith.addf %98, %1 : vector<16x16xf32>
    %cst_36 = arith.constant dense<0xFF800000> : vector<16xf32>
    %100 = vector.multi_reduction <maximumf>, %99, %cst_36 [1] : vector<16x16xf32> to vector<16xf32>
    %101 = vector.shape_cast %100 : vector<16xf32> to vector<16x1xf32>
    %102 = vector.broadcast %101 : vector<16x1xf32> to vector<16x16xf32>
    %103 = arith.subf %99, %102 : vector<16x16xf32>
    %104 = math.exp %103 : vector<16x16xf32>
    %cst_37 = arith.constant dense<0.000000e+00> : vector<16xf32>
    %105 = vector.multi_reduction <add>, %104, %cst_37 [1] : vector<16x16xf32> to vector<16xf32>
    %106 = vector.shape_cast %105 : vector<16xf32> to vector<16x1xf32>
    %107 = tpu.reciprocal %106 {approx = true} : vector<16x1xf32> -> vector<16x1xf32>
    %108 = vector.broadcast %107 : vector<16x1xf32> to vector<16x16xf32>
    %109 = arith.mulf %104, %108 : vector<16x16xf32>
    %cst_38 = arith.constant dense<0.000000e+00> : vector<16x8xf32>
    %110 = tpu.matmul %109, %97, %cst_38 {dimension_numbers = #tpu.dot_dimension_numbers<[1], [0], [0], [1], [0, 0, 1, 1], [], []>} : vector<16x16xf32>, vector<16x8xf32>, vector<16x8xf32> -> vector<16x8xf32>
    %111 = vector.extract_strided_slice %36 {offsets = [24, 0], sizes = [8, 32], strides = [1, 1]} : vector<32x32xf32> to vector<8x32xf32>
    %cst_39 = arith.constant dense<0.000000e+00> : vector<16x32xf32>
    %112 = tpu.matmul %110, %111, %cst_39 {dimension_numbers = #tpu.dot_dimension_numbers<[1], [0], [0], [1], [0, 0, 1, 1], [], []>} : vector<16x8xf32>, vector<8x32xf32>, vector<16x32xf32> -> vector<16x32xf32>
    %113 = arith.addf %94, %112 : vector<16x32xf32>
    %114 = arith.addf %0, %113 : vector<16x32xf32>
    %c0_40 = arith.constant 0 : index
    %c0_41 = arith.constant 0 : index
    %115 = vector.load %arg8[%c0_40, %c0_41] : memref<1x32xf32, #tpu.memory_space<vmem>>, vector<1x32xf32>
    %116 = vector.broadcast %115 : vector<1x32xf32> to vector<16x32xf32>
    %117 = arith.addf %114, %116 : vector<16x32xf32>
    %c0_42 = arith.constant 0 : index
    %c0_43 = arith.constant 0 : index
    %118 = vector.load %arg9[%c0_42, %c0_43] : memref<1x32xf32, #tpu.memory_space<vmem>>, vector<1x32xf32>
    %c0_44 = arith.constant 0 : index
    %c0_45 = arith.constant 0 : index
    %119 = vector.load %arg10[%c0_44, %c0_45] : memref<1x32xf32, #tpu.memory_space<vmem>>, vector<1x32xf32>
    %cst_46 = arith.constant dense<0.000000e+00> : vector<16xf32>
    %120 = vector.multi_reduction <add>, %117, %cst_46 [1] : vector<16x32xf32> to vector<16xf32>
    %121 = vector.shape_cast %120 : vector<16xf32> to vector<16x1xf32>
    %cst_47 = arith.constant 3.200000e+01 : f32
    %122 = vector.broadcast %cst_47 : f32 to vector<16x1xf32>
    %123 = arith.divf %121, %122 : vector<16x1xf32>
    %124 = vector.broadcast %123 : vector<16x1xf32> to vector<16x32xf32>
    %125 = arith.subf %117, %124 : vector<16x32xf32>
    %126 = arith.mulf %125, %125 : vector<16x32xf32>
    %cst_48 = arith.constant dense<0.000000e+00> : vector<16xf32>
    %127 = vector.multi_reduction <add>, %126, %cst_48 [1] : vector<16x32xf32> to vector<16xf32>
    %128 = vector.shape_cast %127 : vector<16xf32> to vector<16x1xf32>
    %cst_49 = arith.constant 3.200000e+01 : f32
    %129 = vector.broadcast %cst_49 : f32 to vector<16x1xf32>
    %130 = arith.divf %128, %129 : vector<16x1xf32>
    %131 = vector.broadcast %123 : vector<16x1xf32> to vector<16x32xf32>
    %132 = arith.subf %117, %131 : vector<16x32xf32>
    %cst_50 = arith.constant 9.99999974E-6 : f32
    %133 = vector.broadcast %cst_50 : f32 to vector<16x1xf32>
    %134 = arith.addf %130, %133 : vector<16x1xf32>
    %135 = math.rsqrt %134 : vector<16x1xf32>
    %136 = vector.broadcast %135 : vector<16x1xf32> to vector<16x32xf32>
    %137 = arith.mulf %132, %136 : vector<16x32xf32>
    %138 = vector.broadcast %118 : vector<1x32xf32> to vector<16x32xf32>
    %139 = arith.mulf %137, %138 : vector<16x32xf32>
    %140 = vector.broadcast %119 : vector<1x32xf32> to vector<16x32xf32>
    %141 = arith.addf %139, %140 : vector<16x32xf32>
    %c0_51 = arith.constant 0 : index
    %c0_52 = arith.constant 0 : index
    %142 = vector.load %arg11[%c0_51, %c0_52] : memref<32x128xf32, #tpu.memory_space<vmem>>, vector<32x128xf32>
    %cst_53 = arith.constant dense<0.000000e+00> : vector<16x128xf32>
    %143 = tpu.matmul %141, %142, %cst_53 {dimension_numbers = #tpu.dot_dimension_numbers<[1], [0], [0], [1], [0, 0, 1, 1], [], []>} : vector<16x32xf32>, vector<32x128xf32>, vector<16x128xf32> -> vector<16x128xf32>
    %c0_54 = arith.constant 0 : index
    %c0_55 = arith.constant 0 : index
    %144 = vector.load %arg12[%c0_54, %c0_55] : memref<1x128xf32, #tpu.memory_space<vmem>>, vector<1x128xf32>
    %145 = vector.broadcast %144 : vector<1x128xf32> to vector<16x128xf32>
    %146 = arith.addf %143, %145 : vector<16x128xf32>
    %cst_56 = arith.constant 5.000000e-01 : f32
    %147 = vector.broadcast %cst_56 : f32 to vector<16x128xf32>
    %148 = arith.mulf %147, %146 : vector<16x128xf32>
    %cst_57 = arith.constant 4.471500e-02 : f32
    %149 = vector.broadcast %cst_57 : f32 to vector<16x128xf32>
    %150 = arith.mulf %149, %146 : vector<16x128xf32>
    %151 = arith.mulf %150, %146 : vector<16x128xf32>
    %152 = arith.mulf %151, %146 : vector<16x128xf32>
    %153 = arith.addf %146, %152 : vector<16x128xf32>
    %cst_58 = arith.constant 0.797884583 : f32
    %154 = vector.broadcast %cst_58 : f32 to vector<16x128xf32>
    %155 = arith.mulf %154, %153 : vector<16x128xf32>
    %156 = math.tanh %155 : vector<16x128xf32>
    %cst_59 = arith.constant 1.000000e+00 : f32
    %157 = vector.broadcast %cst_59 : f32 to vector<16x128xf32>
    %158 = arith.addf %157, %156 : vector<16x128xf32>
    %159 = arith.mulf %148, %158 : vector<16x128xf32>
    %c0_60 = arith.constant 0 : index
    %c0_61 = arith.constant 0 : index
    %160 = vector.load %arg13[%c0_60, %c0_61] : memref<128x32xf32, #tpu.memory_space<vmem>>, vector<128x32xf32>
    %cst_62 = arith.constant dense<0.000000e+00> : vector<16x32xf32>
    %161 = tpu.matmul %159, %160, %cst_62 {dimension_numbers = #tpu.dot_dimension_numbers<[1], [0], [0], [1], [0, 0, 1, 1], [], []>} : vector<16x128xf32>, vector<128x32xf32>, vector<16x32xf32> -> vector<16x32xf32>
    %c0_63 = arith.constant 0 : index
    %c0_64 = arith.constant 0 : index
    %162 = vector.load %arg14[%c0_63, %c0_64] : memref<1x32xf32, #tpu.memory_space<vmem>>, vector<1x32xf32>
    %163 = vector.broadcast %162 : vector<1x32xf32> to vector<16x32xf32>
    %164 = arith.addf %161, %163 : vector<16x32xf32>
    %165 = arith.addf %117, %164 : vector<16x32xf32>
    %c0_65 = arith.constant 0 : index
    %c0_66 = arith.constant 0 : index
    %166 = vector.load %arg15[%c0_65, %c0_66] : memref<16x32xf32, #tpu.memory_space<vmem>>, vector<16x32xf32>
    tpu.vector_store %arg15[%c0_65, %c0_66], %165 {strides = array<i32>} : memref<16x32xf32, #tpu.memory_space<vmem>>, vector<16x32xf32>,
    return
  }
  func.func @transform_0(%arg0: i32) -> (i32, i32) {
    %c0_i32 = arith.constant 0 : i32
    %c0_i32_0 = arith.constant 0 : i32
    %c0_i32_1 = arith.constant 0 : i32
    return %c0_i32, %c0_i32_0 : i32, i32
  }
  func.func @transform_1(%arg0: i32) -> (i32, i32) {
    %c0_i32 = arith.constant 0 : i32
    %c0_i32_0 = arith.constant 0 : i32
    %c0_i32_1 = arith.constant 0 : i32
    return %c0_i32, %c0_i32_0 : i32, i32
  }
  func.func @transform_2(%arg0: i32) -> (i32, i32) {
    %c0_i32 = arith.constant 0 : i32
    %c0_i32_0 = arith.constant 0 : i32
    %c0_i32_1 = arith.constant 0 : i32
    return %c0_i32, %c0_i32_0 : i32, i32
  }
  func.func @transform_3(%arg0: i32) -> (i32, i32) {
    %c0_i32 = arith.constant 0 : i32
    %c0_i32_0 = arith.constant 0 : i32
    %c0_i32_1 = arith.constant 0 : i32
    return %c0_i32, %c0_i32_0 : i32, i32
  }
  func.func @transform_4(%arg0: i32) -> (i32, i32) {
    %c0_i32 = arith.constant 0 : i32
    %c0_i32_0 = arith.constant 0 : i32
    %c0_i32_1 = arith.constant 0 : i32
    return %c0_i32, %c0_i32_0 : i32, i32
  }
  func.func @transform_5(%arg0: i32) -> (i32, i32) {
    %c0_i32 = arith.constant 0 : i32
    %c0_i32_0 = arith.constant 0 : i32
    %c0_i32_1 = arith.constant 0 : i32
    return %c0_i32, %c0_i32_0 : i32, i32
  }
  func.func @transform_6(%arg0: i32) -> (i32, i32) {
    %c0_i32 = arith.constant 0 : i32
    %c0_i32_0 = arith.constant 0 : i32
    %c0_i32_1 = arith.constant 0 : i32
    return %c0_i32, %c0_i32_0 : i32, i32
  }
  func.func @transform_7(%arg0: i32) -> (i32, i32) {
    %c0_i32 = arith.constant 0 : i32
    %c0_i32_0 = arith.constant 0 : i32
    %c0_i32_1 = arith.constant 0 : i32
    return %c0_i32, %c0_i32_0 : i32, i32
  }
  func.func @transform_8(%arg0: i32) -> (i32, i32) {
    %c0_i32 = arith.constant 0 : i32
    %c0_i32_0 = arith.constant 0 : i32
    %c0_i32_1 = arith.constant 0 : i32
    return %c0_i32, %c0_i32_0 : i32, i32
  }
  func.func @transform_9(%arg0: i32) -> (i32, i32) {
    %c0_i32 = arith.constant 0 : i32
    %c0_i32_0 = arith.constant 0 : i32
    %c0_i32_1 = arith.constant 0 : i32
    return %c0_i32, %c0_i32_0 : i32, i32
  }
  func.func @transform_10(%arg0: i32) -> (i32, i32) {
    %c0_i32 = arith.constant 0 : i32
    %c0_i32_0 = arith.constant 0 : i32
    %c0_i32_1 = arith.constant 0 : i32
    return %c0_i32, %c0_i32_0 : i32, i32
  }
  func.func @transform_11(%arg0: i32) -> (i32, i32) {
    %c0_i32 = arith.constant 0 : i32
    %c0_i32_0 = arith.constant 0 : i32
    %c0_i32_1 = arith.constant 0 : i32
    return %c0_i32, %c0_i32_0 : i32, i32
  }
  func.func @transform_12(%arg0: i32) -> (i32, i32) {
    %c0_i32 = arith.constant 0 : i32
    %c0_i32_0 = arith.constant 0 : i32
    %c0_i32_1 = arith.constant 0 : i32
    return %c0_i32, %c0_i32_0 : i32, i32
  }
  func.func @transform_13(%arg0: i32) -> (i32, i32) {
    %c0_i32 = arith.constant 0 : i32
    %c0_i32_0 = arith.constant 0 : i32
    %c0_i32_1 = arith.constant 0 : i32
    return %c0_i32, %c0_i32_0 : i32, i32
  }
  func.func @transform_14(%arg0: i32) -> (i32, i32) {
    %c0_i32 = arith.constant 0 : i32
    %c0_i32_0 = arith.constant 0 : i32
    %c0_i32_1 = arith.constant 0 : i32
    return %c0_i32, %c0_i32_0 : i32, i32
  }
}

</mosaic_0001>

<bundles_post_ra>
// kernel: tpu_custom_call.1
= control target key start
LH: loop header
LB: loop body
LE: loop exit
PB: predicated region body
PF: predicated region fallthrough
CT: control target
= control target key end

     0   :  { %vm54_vm0 = vcmask 261120   ;;  %s2433_s0 = inlined_call_operand.vmem [shape: f32[16,32], index: 0, kind: input, shape index: {}]   ;;  %s2434_s1 = inlined_call_operand.vmem [shape: f32[16,16], index: 1, kind: input, shape index: {}]   ;;  %s2435_s2 = inlined_call_operand.vmem [shape: f32[1,32], index: 2, kind: input, shape index: {}]   ;;  %s2436_s3 = inlined_call_operand.vmem [shape: f32[1,32], index: 3, kind: input, shape index: {}]   ;;  %s2437_s4 = inlined_call_operand.vmem [shape: f32[32,96], index: 4, kind: input, shape index: {}]   ;;  %s2438_s5 = inlined_call_operand.vmem [shape: f32[1,96], index: 5, kind: input, shape index: {}]   ;;  %s2439_s6 = inlined_call_operand.vmem [shape: f32[32,32], index: 6, kind: input, shape index: {}]   ;;  %s2440_s7 = inlined_call_operand.vmem [shape: f32[1,32], index: 7, kind: input, shape index: {}]   ;;  %s2441_s8 = inlined_call_operand.vmem [shape: f32[1,32], index: 8, kind: input, shape index: {}]   ;;  %s2442_s9 = inlined_call_operand.vmem [shape: f32[1,32], index: 9, kind: input, shape index: {}]   ;;  %s2443_s10 = inlined_call_operand.vmem [shape: f32[32,128], index: 10, kind: input, shape index: {}]   ;;  %s2444_s11 = inlined_call_operand.vmem [shape: f32[1,128], index: 11, kind: input, shape index: {}]   ;;  %s2445_s12 = inlined_call_operand.vmem [shape: f32[128,32], index: 12, kind: input, shape index: {}]   ;;  %s2446_s13 = inlined_call_operand.vmem [shape: f32[1,32], index: 13, kind: input, shape index: {}]   ;;  %s2447_s14 = inlined_call_operand.hbm [shape: f32[16,32], index: 14, kind: output, shape index: {}]  }
   0x1   :  { %v2168_v0 = vld [vmem:[%s2433_s0] sm:$0xff]  ;;  %v2173_v1 = vld [vmem:[%s2433_s0 + $0x8] sm:$0xff] }
   0x2   :  { %19 = vsyncpa [#allocation3], 0  ;;  %v55_v2 = vsel %vm54_vm0, %v2168_v0, 0.0  ;;  %v58_v3 = vsel %vm54_vm0, %v2173_v1, 0.0  ;;  %v98_v14 = vld [vmem:[%s2437_s4] sm:$0xff]  ;;  %v99_v15 = vld [vmem:[%s2437_s4 + $0x8] sm:$0xff] }
   0x3   :  { %56 = vadd.xlane.f32.xlu0 %v55_v2  ;;  %v100_v16 = vld [vmem:[%s2437_s4 + $0x10] sm:$0xff]  ;;  %v1860_v17 = vpack.c.bf16 %v99_v15, %v98_v14  ;;  %v101_v18 = vld [vmem:[%s2437_s4 + $0x18] sm:$0xff]  ;;  %v1609_v27 = vld [vmem:[%s2435_s2] ss:$0 sm:$0xff]  ;;  %vm202_vm1 = vcmask 64512   ;;  %s2076_s2 = smov 96  }
   0x4   :  { %v1864_v19 = vpack.c.bf16 %v101_v18, %v100_v16  ;;  %v1610_v29 = vld [vmem:[%s2436_s3] ss:$0 sm:$0xff]  ;;  %s2077_s3 = smov 88   ;;  %s2078_s29 = smov 120   ;;  %vm2220_vm2 = vmpackc.low %vm202_vm1, %vm202_vm1  ;;  %v2238_v51 = vld [vmem:[%s2434_s1 + $0x8] sm:$0xff]  ;;  %vm288_vm3 = vcmask 130048  }
   0x5   :  { %1861 = vmatprep.subr.bf16.mxu1 %v1860_v17  ;;  %v1611_v36 = vld [vmem:[%s2438_s5] ss:$0 sm:$0xff]  ;;  %s2080_s0 = smov 56   ;;  %s2081_s17 = smov 112  }
   0x6   :  { %1863 = vmatpush3.bf16.msra.mxu1 %v1860_v17  ;;  %v2233_v49 = vld [vmem:[%s2434_s1] sm:$0xff]  ;;  %s2079_s1 = smov 64   ;;  %s2082_s18 = smov 72  }
   0x7   :  { %59 = vadd.xlane.f32.xlu0 %v58_v3  ;;  %1865 = vmatprep.subr.bf16.mxu1 %v1864_v19  ;;  %s2083_s19 = smov 104   ;;  %s2084_s20 = smov 80  }
   0x8   :  { %s2085_s25 = smov 48   ;;  %s2086_s4 = smov 40  }
   0xa   :  { %1867 = vmatpush3.bf16.msra.mxu1 %v1864_v19 }
  0x90   :  { %v57_v4 = vpop.xlane.xlu0 %56 }
  0x91   :  { %v62_v5 = vmul.f32 0.03125, %v57_v4 }
  0x93   :  { %v64_v6 = vsub.f32 %v2168_v0, %v62_v5 }
  0x94   :  { %v60_v7 = vpop.xlane.xlu0 %59 }
  0x95   :  { %v63_v8 = vmul.f32 0.03125, %v60_v7  ;;  %v66_v9 = vmul.f32 %v64_v6, %v64_v6 }
  0x97   :  { %v65_v10 = vsub.f32 %v2173_v1, %v63_v8  ;;  %v68_v11 = vsel %vm54_vm0, %v66_v9, 0.0 }
  0x98   :  { %69 = vadd.xlane.f32.xlu1 %v68_v11 }
  0x99   :  { %v67_v12 = vmul.f32 %v65_v10, %v65_v10 }
  0x9b   :  { %v71_v13 = vsel %vm54_vm0, %v67_v12, 0.0 }
  0x9c   :  { %72 = vadd.xlane.f32.xlu1 %v71_v13 }
 0x125   :  { %v70_v20 = vpop.xlane.xlu1 %69 }
 0x126   :  { %v74_v21 = vmul.f32 0.03125, %v70_v20 }
 0x128   :  { %v76_v22 = vadd.f32 1e-05, %v74_v21 }
 0x129   :  { %v73_v23 = vpop.xlane.xlu1 %72 }
 0x12a   :  { %2008 = vrsqrt.f32 %v76_v22  ;;  %v75_v24 = vmul.f32 0.03125, %v73_v23 }
 0x12c   :  { %v77_v25 = vadd.f32 1e-05, %v75_v24 }
 0x12e   :  { %2010 = vrsqrt.f32 %v77_v25 }
 0x134   :  { %v2009_v26 = vpop.eup %2008 }
 0x135   :  { %v80_v28 = vmul.f32 %v2009_v26, %v64_v6 }
 0x137   :  { %v88_v30 = vmul.f32 %v1609_v27, %v80_v28 }
 0x138   :  { %v2011_v31 = vpop.eup %2010 }
 0x139   :  { %v81_v32 = vmul.f32 %v2011_v31, %v65_v10  ;;  %v96_v33 = vadd.f32 %v1610_v29, %v88_v30 }
 0x13b   :  { %v89_v34 = vmul.f32 %v1609_v27, %v81_v32  ;;  %1735 = vmatprep.mubr.msk.f32.mxu1 %vm54_vm0, %v96_v33 }
 0x13d   :  { %v97_v35 = vadd.f32 %v1610_v29, %v89_v34 }
 0x13f   :  { %1736 = vmatmul.mubr.msk.f32.vlgmr.msra.gmra.mrb[0].mxu1 %vm54_vm0, %v97_v35 }
 0x212   :  { %v1737_v37 = vpop.f32.mrb[0].mxu1 }
 0x213   :  { %v187_v38 = vadd.f32 %v1737_v37, %v1611_v36  ;;  %v181_v39 = vpop.f32.mrb[1].mxu1 }
 0x214   :  { %v182_v40 = vadd.f32 %v1611_v36, %v181_v39 }
 0x215   :  { %v2215_v43 = vmul.f32 0.35355338, %v187_v38 }
 0x216   :  { %v2206_v41 = vpack.i.bf16 %v187_v38, %v182_v40  ;;  %v2208_v42 = vmul.f32 0.35355338, %v182_v40 }
 0x218   :  { %1969 = vrot.lane.b32.xlu0 %v2206_v41, %s2076_s2  ;;  %1742 = vmatprep.mubr.msk.f32.mxu1 %vm202_vm1, %v2208_v42 }
 0x21c   :  { %1979 = vrot.lane.b32.xlu0 %v2206_v41, %s2077_s3 }
 0x220   :  { %398 = vrot.lane.b32.xlu0 %v2208_v42, %s2078_s29 }
 0x224   :  { %400 = vrot.lane.b32.xlu0 %v2215_v43, %s2078_s29 }
 0x28a   :  { %v1970_v44 = vpop.permute.xlu0 %1969 }
 0x28b   :  { %v1972_v45 = vunpack.i.h.bf16 %v1970_v44  ;;  %v1971_v46 = vunpack.i.l.bf16 %v1970_v44 }
 0x28d   :  { %v1868_v48 = vpack.c.bf16 %v1972_v45, %v1971_v46 }
 0x28e   :  { %v1980_v7 = vpop.permute.xlu0 %1979 }
 0x28f   :  { %1870 = vmatprep.subr.msk.bf16.mxu1 %vm2220_vm2, %v1868_v48  ;;  %v1982_v9 = vunpack.i.h.bf16 %v1980_v7  ;;  %v1981_v10 = vunpack.i.l.bf16 %v1980_v7 }
 0x290   :  { %1873 = vmatpush3.bf16.xpose.msk.msra.mxu1 %vm2220_vm2, %v1868_v48 }
 0x291   :  { %v1878_v14 = vpack.c.bf16 %v1982_v9, %v1981_v10 }
 0x292   :  { %v399_v19 = vpop.permute.xlu0 %398 }
 0x296   :  { %v401_v20 = vpop.permute.xlu0 %400 }
 0x297   :  { %1743 = vmatmul.mubr.msk.f32.vlgmr.msra.gmra.mrb[2].mxu1 %vm202_vm1, %v2215_v43 }
 0x36a   :  { %v1744_v50 = vpop.f32.mrb[2].mxu1 }
 0x36b   :  { %v279_v52 = vpop.f32.mrb[3].mxu1  ;;  %v285_v54 = vadd.f32 %v1744_v50, %v2238_v51 }
 0x36c   :  { %v280_v53 = vadd.f32 %v279_v52, %v2233_v49 }
 0x36d   :  { %v292_v56 = vsel %vm288_vm3, %v285_v54, -inf }
 0x36e   :  { %v289_v55 = vsel %vm288_vm3, %v280_v53, -inf }
 0x36f   :  { %290 = vmax.xlane.f32.xlu1 %v289_v55 }
 0x373   :  { %293 = vmax.xlane.f32.xlu1 %v292_v56 }
 0x3fc   :  { %v291_v57 = vpop.xlane.xlu1 %290 }
 0x3fd   :  { %v295_v58 = vsub.f32 %v280_v53, %v291_v57 }
 0x3ff   :  { %v297_v61 = vmul.f32 1.442695, %v295_v58 }
 0x400   :  { %v294_v59 = vpop.xlane.xlu1 %293 }
 0x401   :  { %v296_v60 = vsub.f32 %v285_v54, %v294_v59 }
 0x403   :  { %v299_v62 = vmul.f32 1.442695, %v296_v60 }
 0x405   :  { %2012 = vpow2.f32 %v299_v62 }
 0x406   :  { %2014 = vpow2.f32 %v297_v61 }
 0x40f   :  { %v2013_v63 = vpop.eup %2012 }
 0x410   :  { %v304_v2 = vsel %vm288_vm3, %v2013_v63, 0.0  ;;  %v2015_v3 = vpop.eup %2014 }
 0x411   :  { %305 = vadd.xlane.f32.xlu1 %v304_v2  ;;  %v301_v4 = vsel %vm288_vm3, %v2015_v3, 0.0 }
 0x415   :  { %302 = vadd.xlane.f32.xlu1 %v301_v4  ;;  %v192_v4 = vld [vmem:[%s2439_s6] sm:$0xff] }
 0x426   :  { %1974 = vrot.lane.b32.xlu1 %v2206_v41, %s2079_s1 }
 0x49e   :  { %v306_v5 = vpop.xlane.xlu1 %305 }
 0x49f   :  { %2016 = vrcp.f32 %v306_v5 }
 0x4a2   :  { %v303_v6 = vpop.xlane.xlu1 %302 }
 0x4a3   :  { %2018 = vrcp.f32 %v303_v6 }
 0x4a6   :  { %v1975_v8 = vpop.permute.xlu1 %1974 }
 0x4a7   :  { %v1977_v11 = vunpack.i.h.bf16 %v1975_v8  ;;  %v1976_v12 = vunpack.i.l.bf16 %v1975_v8 }
 0x4a9   :  { %v1874_v13 = vpack.c.bf16 %v1977_v11, %v1976_v12  ;;  %v2017_v15 = vpop.eup %2016 }
 0x4aa   :  { %v310_v18 = vmul.f32 %v2017_v15, %v2013_v63 }
 0x4ab   :  { %1875 = vmatprep.subr.bf16.mxu1 %v1874_v13 }
 0x4ac   :  { %1877 = vmatpush3.bf16.msra.mxu1 %v1874_v13 }
 0x4ad   :  { %v2019_v16 = vpop.eup %2018  ;;  %1880 = vmatprep.subr.msk.bf16.mxu1 %vm2220_vm2, %v1878_v14 }
 0x4ae   :  { %v309_v17 = vmul.f32 %v2019_v16, %v2015_v3  ;;  %v193_v3 = vld [vmem:[%s2439_s6 + $0x8] sm:$0xff] }
 0x4af   :  { %1766 = vmatprep.subr.mxu0 %v193_v3 }
 0x4b0   :  { %1749 = vmatprep.mubr.msk.f32.mxu1 %vm288_vm3, %v309_v17  ;;  %1767 = vmatpush3.msra.mxu0 %v193_v3 }
 0x4b1   :  { %1750 = vmatmul.mubr.msk.f32.vlgmr.msra.gmra.mrb[4].mxu1 %vm288_vm3, %v310_v18  ;;  %1771 = vmatprep.subr.mxu0 %v192_v4 }
 0x4b2   :  { %1756 = vmatprep.mubr.msk.f32.mxu1 %vm202_vm1, %v399_v19 }
 0x4b5   :  { %1883 = vmatpush3.bf16.xpose.msk.msra.mxu1 %vm2220_vm2, %v1878_v14 }
 0x4bc   :  { %1757 = vmatmul.mubr.msk.f32.vlgmr.msra.gmra.mrb[6].mxu1 %vm202_vm1, %v401_v20 }
 0x584   :  { %v2255_v21 = vpop.f32.mrb[4].mxu1 }
 0x585   :  { %v2257_v22 = vpop.f32.mrb[5].mxu1 }
 0x58f   :  { %v1758_v23 = vpop.f32.mrb[6].mxu1 }
 0x590   :  { %v486_v24 = vadd.f32 %v1758_v23, %v2238_v51  ;;  %v480_v25 = vpop.f32.mrb[7].mxu1 }
 0x591   :  { %v481_v26 = vadd.f32 %v480_v25, %v2233_v49 }
 0x592   :  { %v492_v27 = vsel %vm288_vm3, %v486_v24, -inf }
 0x593   :  { %493 = vmax.xlane.f32.xlu0 %v492_v27  ;;  %v489_v28 = vsel %vm288_vm3, %v481_v26, -inf }
 0x594   :  { %490 = vmax.xlane.f32.xlu1 %v489_v28 }
 0x5a5   :  { %1984 = vrot.lane.b32.xlu1 %v2206_v41, %s2080_s0 }
 0x5a9   :  { %760 = vrot.lane.b32.xlu1 %v2208_v42, %s2081_s17 }
 0x5ad   :  { %762 = vrot.lane.b32.xlu1 %v2215_v43, %s2081_s17 }
 0x5b1   :  { %1994 = vrot.lane.b32.xlu1 %v2206_v41, %s2082_s18 }
 0x5b5   :  { %1045 = vrot.lane.b32.xlu1 %v2215_v43, %s2083_s19 }
 0x620   :  { %v494_v29 = vpop.xlane.xlu0 %493 }
 0x621   :  { %v496_v30 = vsub.f32 %v486_v24, %v494_v29  ;;  %v491_v31 = vpop.xlane.xlu1 %490 }
 0x622   :  { %v495_v32 = vsub.f32 %v481_v26, %v491_v31 }
 0x623   :  { %v499_v33 = vmul.f32 1.442695, %v496_v30 }
 0x624   :  { %v497_v34 = vmul.f32 1.442695, %v495_v32 }
 0x625   :  { %2020 = vpow2.f32 %v499_v33  ;;  %v1985_v35 = vpop.permute.xlu1 %1984 }
 0x626   :  { %v1987_v36 = vunpack.i.h.bf16 %v1985_v35  ;;  %v1986_v37 = vunpack.i.l.bf16 %v1985_v35  ;;  %2022 = vpow2.f32 %v497_v34 }
 0x628   :  { %v1884_v38 = vpack.c.bf16 %v1987_v36, %v1986_v37 }
 0x629   :  { %v761_v45 = vpop.permute.xlu1 %760 }
 0x62a   :  { %1885 = vmatprep.subr.bf16.mxu1 %v1884_v38 }
 0x62b   :  { %1887 = vmatpush3.bf16.msra.mxu1 %v1884_v38 }
 0x62d   :  { %v763_v50 = vpop.permute.xlu1 %762 }
 0x62f   :  { %v2021_v39 = vpop.eup %2020 }
 0x630   :  { %v504_v40 = vsel %vm288_vm3, %v2021_v39, 0.0  ;;  %v2023_v44 = vpop.eup %2022 }
 0x631   :  { %505 = vadd.xlane.f32.xlu0 %v504_v40  ;;  %v501_v43 = vsel %vm288_vm3, %v2023_v44, 0.0  ;;  %v1995_v56 = vpop.permute.xlu1 %1994 }
 0x632   :  { %v1997_v59 = vunpack.i.h.bf16 %v1995_v56  ;;  %v1996_v60 = vunpack.i.l.bf16 %v1995_v56 }
 0x634   :  { %v1898_v62 = vpack.c.bf16 %v1997_v59, %v1996_v60 }
 0x635   :  { %502 = vadd.xlane.f32.xlu0 %v501_v43  ;;  %v1046_v2 = vpop.permute.xlu1 %1045  ;;  %v194_v43 = vld [vmem:[%s2439_s6 + $0x10] sm:$0xff] }
 0x64b   :  { %1989 = vrot.lane.b32.xlu0 %v2206_v41, %s2084_s20 }
 0x64f   :  { %1043 = vrot.lane.b32.xlu0 %v2208_v42, %s2083_s19 }
 0x6be   :  { %v506_v46 = vpop.xlane.xlu0 %505 }
 0x6bf   :  { %2024 = vrcp.f32 %v506_v46 }
 0x6c2   :  { %v503_v48 = vpop.xlane.xlu0 %502 }
 0x6c3   :  { %2026 = vrcp.f32 %v503_v48 }
 0x6c6   :  { %v1990_v52 = vpop.permute.xlu0 %1989 }
 0x6c7   :  { %v1992_v53 = vunpack.i.h.bf16 %v1990_v52  ;;  %v1991_v54 = vunpack.i.l.bf16 %v1990_v52 }
 0x6c9   :  { %v1888_v55 = vpack.c.bf16 %v1992_v53, %v1991_v54  ;;  %v2025_v57 = vpop.eup %2024 }
 0x6ca   :  { %v510_v42 = vmul.f32 %v2025_v57, %v2021_v39  ;;  %v1044_v63 = vpop.permute.xlu0 %1043 }
 0x6cb   :  { %1890 = vmatprep.subr.msk.bf16.mxu1 %vm2220_vm2, %v1888_v55 }
 0x6cd   :  { %v2027_v58 = vpop.eup %2026 }
 0x6ce   :  { %v509_v61 = vmul.f32 %v2027_v58, %v2023_v44 }
 0x6d0   :  { %1763 = vmatprep.mubr.msk.f32.mxu1 %vm288_vm3, %v509_v61 }
 0x6d1   :  { %1764 = vmatmul.mubr.msk.f32.vlgmr.msra.gmra.mrb[8].mxu1 %vm288_vm3, %v510_v42  ;;  %v195_v42 = vld [vmem:[%s2439_s6 + $0x18] sm:$0xff] }
 0x6d2   :  { %1893 = vmatpush3.bf16.xpose.msk.msra.mxu1 %vm2220_vm2, %v1888_v55  ;;  %1780 = vmatprep.mubr.msk.f32.mxu1 %vm202_vm1, %v761_v45 }
 0x6d3   :  { %1900 = vmatprep.subr.msk.bf16.mxu1 %vm2220_vm2, %v1898_v62 }
 0x6d9   :  { %1781 = vmatmul.mubr.msk.f32.vlgmr.msra.gmra.mrb[10].mxu1 %vm202_vm1, %v763_v50 }
 0x6da   :  { %1903 = vmatpush3.bf16.xpose.msk.msra.mxu1 %vm2220_vm2, %v1898_v62  ;;  %1799 = vmatprep.mubr.msk.f32.mxu1 %vm202_vm1, %v1044_v63 }
 0x6e1   :  { %1800 = vmatmul.mubr.msk.f32.vlgmr.msra.gmra.mrb[12].mxu1 %vm202_vm1, %v1046_v2 }
 0x7a4   :  { %v1765_v5 = vpop.f32.mrb[8].mxu1 }
 0x7a5   :  { %v589_v6 = vpop.f32.mrb[9].mxu1 }
 0x7a6   :  { %1768 = vmatprep.mubr.msk.f32.mxu0 %vm202_vm1, %v589_v6 }
 0x7a7   :  { %1769 = vmatmul.mubr.msk.f32.vlgmr.msra.gmra.mrb[0].mxu0 %vm202_vm1, %v1765_v5 }
 0x7a8   :  { %1773 = vmatprep.mubr.msk.f32.mxu0 %vm202_vm1, %v2257_v22  ;;  %1772 = vmatpush3.msra.mxu0 %v192_v4  ;;  %v1646_v4 = vld [vmem:[%s2440_s7] ss:$0 sm:$0xff] }
 0x7ac   :  { %v1782_v47 = vpop.f32.mrb[10].mxu1 }
 0x7ad   :  { %v848_v7 = vadd.f32 %v1782_v47, %v2238_v51  ;;  %v842_v8 = vpop.f32.mrb[11].mxu1 }
 0x7ae   :  { %v843_v9 = vadd.f32 %v842_v8, %v2233_v49 }
 0x7af   :  { %v854_v10 = vsel %vm288_vm3, %v848_v7, -inf  ;;  %1774 = vmatmul.mubr.msk.f32.vlgmr.msra.gmra.mrb[0].mxu0 %vm202_vm1, %v2255_v21 }
 0x7b0   :  { %855 = vmax.xlane.f32.xlu1 %v854_v10  ;;  %v851_v11 = vsel %vm288_vm3, %v843_v9, -inf }
 0x7b1   :  { %852 = vmax.xlane.f32.xlu0 %v851_v11 }
 0x7b4   :  { %v1801_v12 = vpop.f32.mrb[12].mxu1 }
 0x7b5   :  { %v1125_v13 = vpop.f32.mrb[13].mxu1  ;;  %v1131_v15 = vadd.f32 %v1801_v12, %v2238_v51 }
 0x7b6   :  { %v1126_v14 = vadd.f32 %v1125_v13, %v2233_v49 }
 0x7b7   :  { %v1137_v17 = vsel %vm288_vm3, %v1131_v15, -inf }
 0x7b8   :  { %v1134_v16 = vsel %vm288_vm3, %v1126_v14, -inf }
 0x7b9   :  { %1135 = vmax.xlane.f32.xlu1 %v1134_v16 }
 0x7bd   :  { %1138 = vmax.xlane.f32.xlu1 %v1137_v17 }
 0x83d   :  { %v856_v18 = vpop.xlane.xlu1 %855 }
 0x83e   :  { %v858_v19 = vsub.f32 %v848_v7, %v856_v18  ;;  %v853_v20 = vpop.xlane.xlu0 %852 }
 0x83f   :  { %v857_v21 = vsub.f32 %v843_v9, %v853_v20  ;;  %v1382_v20 = vld [vmem:[%s2443_s10 + $0x8] sm:$0xff] }
 0x840   :  { %v861_v22 = vmul.f32 1.442695, %v858_v19  ;;  %v1381_v19 = vld [vmem:[%s2443_s10] sm:$0xff] }
 0x841   :  { %v859_v23 = vmul.f32 1.442695, %v857_v21  ;;  %v1908_v21 = vpack.c.bf16 %v1382_v20, %v1381_v19 }
 0x842   :  { %2028 = vpow2.f32 %v861_v22  ;;  %v1383_v22 = vld [vmem:[%s2443_s10 + $0x10] sm:$0xff] }
 0x843   :  { %2030 = vpow2.f32 %v859_v23  ;;  %1909 = vmatprep.subr.bf16.mxu1 %v1908_v21  ;;  %v1384_v23 = vld [vmem:[%s2443_s10 + $0x18] sm:$0xff] }
 0x844   :  { %1911 = vmatpush3.bf16.msra.mxu1 %v1908_v21 }
 0x846   :  { %v1136_v24 = vpop.xlane.xlu1 %1135 }
 0x847   :  { %v1140_v25 = vsub.f32 %v1126_v14, %v1136_v24  ;;  %v1912_v24 = vpack.c.bf16 %v1384_v23, %v1383_v22 }
 0x849   :  { %v1142_v51 = vmul.f32 1.442695, %v1140_v25  ;;  %1913 = vmatprep.subr.bf16.mxu1 %v1912_v24  ;;  %v1491_v25 = vld [vmem:[%s2445_s12] sm:$0xff] }
 0x84a   :  { %v1139_v26 = vpop.xlane.xlu1 %1138  ;;  %1915 = vmatpush3.bf16.msra.mxu1 %v1912_v24 }
 0x84b   :  { %v1141_v49 = vsub.f32 %v1131_v15, %v1139_v26  ;;  %v1492_v26 = vld [vmem:[%s2445_s12 + $0x8] sm:$0xff] }
 0x84c   :  { %v2029_v27 = vpop.eup %2028 }
 0x84d   :  { %v1144_v28 = vmul.f32 1.442695, %v1141_v49  ;;  %v866_v29 = vsel %vm288_vm3, %v2029_v27, 0.0  ;;  %v2031_v30 = vpop.eup %2030  ;;  %v1916_v49 = vpack.c.bf16 %v1492_v26, %v1491_v25  ;;  %v1652_v26 = vld [vmem:[%s2446_s13] ss:$0 sm:$0xff] }
 0x84e   :  { %867 = vadd.xlane.f32.xlu0 %v866_v29  ;;  %v863_v31 = vsel %vm288_vm3, %v2031_v30, 0.0 }
 0x84f   :  { %2032 = vpow2.f32 %v1144_v28 }
 0x850   :  { %2034 = vpow2.f32 %v1142_v51 }
 0x852   :  { %864 = vadd.xlane.f32.xlu0 %v863_v31 }
 0x859   :  { %v2033_v32 = vpop.eup %2032 }
 0x85a   :  { %v1149_v33 = vsel %vm288_vm3, %v2033_v32, 0.0  ;;  %v2035_v34 = vpop.eup %2034 }
 0x85b   :  { %1150 = vadd.xlane.f32.xlu1 %v1149_v33  ;;  %v1146_v35 = vsel %vm288_vm3, %v2035_v34, 0.0  ;;  %v1647_v33 = vld [vmem:[%s2441_s8] ss:$0 sm:$0xff] }
 0x85f   :  { %1147 = vadd.xlane.f32.xlu1 %v1146_v35  ;;  %v1648_v35 = vld [vmem:[%s2442_s9] ss:$0 sm:$0xff] }
 0x868   :  { %1999 = vrot.lane.b32.xlu0 %v2206_v41, %s2085_s25 }
 0x870   :  { %2004 = vrot.lane.b32.xlu1 %v2206_v41, %s2086_s4  ;;  %s2087_s4 = smov [#allocation2]  }
 0x871   :  { %s1598_s9 = sshll.u32 %s2087_s4, 4  ;;  %s1599_s9 = int_to_ptr.vmem [resolvable:$true] %s1598_s9 }
 0x872   :  { %s2052_s26 = scalar_lea.vmem %s1599_s9, 256  ;;  %p2057_p1 = scmp.lt.s32.totalorder %s1599_s9, %s1599_s9 }
 0x873   :  { %p2053_p0 = scmp.ne.s32.totalorder %s1599_s9, %s2052_s26  ;;  %p2058_p2 = scmp.lt.s32.totalorder %s2052_s26, %s2052_s26 }
 0x875   :  { %p2059_p3 = por %p2058_p2, %p2057_p1 }
 0x877   :  { %p2060_p4 = pnand %p2059_p3, %p2053_p0 }
 0x8db   :  { %v868_v36 = vpop.xlane.xlu0 %867 }
 0x8dc   :  { %2036 = vrcp.f32 %v868_v36 }
 0x8df   :  { %v865_v37 = vpop.xlane.xlu0 %864 }
 0x8e0   :  { %2038 = vrcp.f32 %v865_v37 }
 0x8e3   :  { %v2000_v38 = vpop.permute.xlu0 %1999 }
 0x8e4   :  { %v2002_v39 = vunpack.i.h.bf16 %v2000_v38  ;;  %v2001_v40 = vunpack.i.l.bf16 %v2000_v38 }
 0x8e6   :  { %v1894_v44 = vpack.c.bf16 %v2002_v39, %v2001_v40  ;;  %v2037_v46 = vpop.eup %2036 }
 0x8e7   :  { %v872_v41 = vmul.f32 %v2037_v46, %v2029_v27 }
 0x8e8   :  { %v1151_v45 = vpop.xlane.xlu1 %1150  ;;  %1895 = vmatprep.subr.bf16.mxu0 %v1894_v44 }
 0x8e9   :  { %1897 = vmatpush3.bf16.msra.mxu0 %v1894_v44 }
 0x8ea   :  { %v2039_v48 = vpop.eup %2038  ;;  %1790 = vmatprep.subr.mxu0 %v194_v43 }
 0x8eb   :  { %v871_v50 = vmul.f32 %v2039_v48, %v2031_v30  ;;  %v1495_v48 = vld [vmem:[%s2445_s12 + $0x20] sm:$0xff] }
 0x8ec   :  { %v1148_v52 = vpop.xlane.xlu1 %1147 }
 0x8ed   :  { %1787 = vmatprep.mubr.msk.f32.mxu0 %vm288_vm3, %v871_v50  ;;  %2040 = vrcp.f32 %v1148_v52  ;;  %v1496_v50 = vld [vmem:[%s2445_s12 + $0x28] sm:$0xff]  ;;  %v1497_v52 = vld [vmem:[%s2445_s12 + $0x30] sm:$0xff] }
 0x8ee   :  { %1788 = vmatmul.mubr.msk.f32.vlgmr.msra.gmra.mrb[2].mxu0 %vm288_vm3, %v872_v41  ;;  %2042 = vrcp.f32 %v1151_v45  ;;  %v1494_v45 = vld [vmem:[%s2445_s12 + $0x18] sm:$0xff]  ;;  %v1924_v41 = vpack.c.bf16 %v1496_v50, %v1495_v48 }
 0x8ef   :  { %1791 = vmatpush3.msra.mxu0 %v194_v43  ;;  %v1493_v43 = vld [vmem:[%s2445_s12 + $0x10] sm:$0xff] }
 0x8f0   :  { %v2005_v53 = vpop.permute.xlu1 %2004  ;;  %v1920_v46 = vpack.c.bf16 %v1494_v45, %v1493_v43 }
 0x8f1   :  { %v2007_v54 = vunpack.i.h.bf16 %v2005_v53  ;;  %v2006_v55 = vunpack.i.l.bf16 %v2005_v53  ;;  %v1498_v53 = vld [vmem:[%s2445_s12 + $0x38] sm:$0xff] }
 0x8f3   :  { %v1904_v56 = vpack.c.bf16 %v2007_v54, %v2006_v55  ;;  %v1928_v54 = vpack.c.bf16 %v1498_v53, %v1497_v52  ;;  %v1499_v55 = vld [vmem:[%s2445_s12 + $0x40] sm:$0xff] }
 0x8f5   :  { %1905 = vmatprep.subr.bf16.mxu0 %v1904_v56 }
 0x8f7   :  { %v2041_v57 = vpop.eup %2040 }
 0x8f8   :  { %v2043_v60 = vpop.eup %2042  ;;  %v1154_v61 = vmul.f32 %v2041_v57, %v2035_v34 }
 0x8f9   :  { %v1155_v62 = vmul.f32 %v2043_v60, %v2033_v32 }
 0x9c1   :  { %v1789_v58 = vpop.f32.mrb[2].mxu0 }
 0x9c2   :  { %v951_v59 = vpop.f32.mrb[3].mxu0 }
 0x9c3   :  { %1792 = vmatprep.mubr.msk.f32.mxu0 %vm202_vm1, %v951_v59  ;;  %v1502_v59 = vld [vmem:[%s2445_s12 + $0x58] sm:$0xff] }
 0x9c4   :  { %1793 = vmatmul.mubr.msk.f32.vlgmr.msra.gmra.mrb[0].mxu0 %vm202_vm1, %v1789_v58  ;;  %v1501_v58 = vld [vmem:[%s2445_s12 + $0x50] sm:$0xff] }
 0x9c5   :  { %1907 = vmatpush3.bf16.msra.mxu0 %v1904_v56  ;;  %1806 = vmatprep.mubr.msk.f32.mxu0 %vm288_vm3, %v1154_v61  ;;  %v1500_v56 = vld [vmem:[%s2445_s12 + $0x48] sm:$0xff]  ;;  %v1936_v60 = vpack.c.bf16 %v1502_v59, %v1501_v58  ;;  %v1503_v61 = vld [vmem:[%s2445_s12 + $0x60] sm:$0xff] }
 0x9c6   :  { %1809 = vmatprep.subr.mxu0 %v195_v42  ;;  %v1932_v57 = vpack.c.bf16 %v1500_v56, %v1499_v55 }
 0x9c8   :  { %1807 = vmatmul.mubr.msk.f32.vlgmr.msra.gmra.mrb[4].mxu0 %vm288_vm3, %v1155_v62 }
 0x9c9   :  { %1810 = vmatpush3.msra.mxu0 %v195_v42  ;;  %v1504_v42 = vld [vmem:[%s2445_s12 + $0x68] sm:$0xff] }
 0x9ca   :  { %1917 = vmatprep.subr.bf16.mxu0 %v1916_v49  ;;  %v1940_v62 = vpack.c.bf16 %v1504_v42, %v1503_v61 }
 0xa9b   :  { %v1808_v63 = vpop.f32.mrb[4].mxu0 }
 0xa9c   :  { %v1234_v2 = vpop.f32.mrb[5].mxu0 }
 0xa9d   :  { %1811 = vmatprep.mubr.msk.f32.mxu0 %vm202_vm1, %v1234_v2  ;;  %v1506_v2 = vld [vmem:[%s2445_s12 + $0x78] sm:$0xff] }
 0xa9e   :  { %1812 = vmatmul.mubr.msk.f32.vlgmr.msra.gmra.mrb[0].mxu0 %vm202_vm1, %v1808_v63  ;;  %v1505_v63 = vld [vmem:[%s2445_s12 + $0x70] sm:$0xff] }
 0xa9f   :  { %1919 = vmatpush3.bf16.msra.mxu0 %v1916_v49 }
 0xaa0   :  { %1921 = vmatprep.subr.bf16.mxu0 %v1920_v46 }
 0xaa3   :  { %1923 = vmatpush3.bf16.msra.mxu0 %v1920_v46 }
 0xaa4   :  { %1925 = vmatprep.subr.bf16.mxu0 %v1924_v41 }
 0xaa7   :  { %1927 = vmatpush3.bf16.msra.mxu0 %v1924_v41 }
 0xaa8   :  { %1929 = vmatprep.subr.bf16.mxu0 %v1928_v54 }
 0xaab   :  { %1931 = vmatpush3.bf16.msra.mxu0 %v1928_v54 }
 0xaac   :  { %1933 = vmatprep.subr.bf16.mxu0 %v1932_v57 }
 0xaaf   :  { %1935 = vmatpush3.bf16.msra.mxu0 %v1932_v57 }
 0xab0   :  { %1937 = vmatprep.subr.bf16.mxu0 %v1936_v60 }
 0xab3   :  { %1939 = vmatpush3.bf16.msra.mxu0 %v1936_v60 }
 0xab4   :  { %1941 = vmatprep.subr.bf16.mxu0 %v1940_v62 }
 0xab7   :  { %1943 = vmatpush3.bf16.msra.mxu0 %v1940_v62 }
 0xb71   :  { %v1813_v3 = vpop.f32.mrb[0].mxu0 }
 0xb72   :  { %v1327_v5 = vadd.f32 %v1813_v3, %v2173_v1  ;;  %v1315_v6 = vpop.f32.mrb[1].mxu0  ;;  %v1944_v3 = vpack.c.bf16 %v1506_v2, %v1505_v63 }
 0xb73   :  { %v1326_v47 = vadd.f32 %v1315_v6, %v2168_v0 }
 0xb74   :  { %v2331_v7 = vadd.f32 %v1646_v4, %v1327_v5  ;;  %1945 = vmatprep.subr.bf16.mxu0 %v1944_v3 }
 0xb75   :  { %v2333_v8 = vadd.f32 %v1646_v4, %v1326_v47  ;;  %1947 = vmatpush3.bf16.msra.mxu0 %v1944_v3  ;;  %v1649_v4 = vld [vmem:[%s2444_s11] ss:$0 sm:$0xff] }
 0xb76   :  { %v1342_v9 = vsel %vm54_vm0, %v2331_v7, 0.0 }
 0xb77   :  { %1343 = vadd.xlane.f32.xlu1 %v1342_v9  ;;  %v1339_v10 = vsel %vm54_vm0, %v2333_v8, 0.0 }
 0xb78   :  { %1340 = vadd.xlane.f32.xlu0 %v1339_v10 }
 0xc04   :  { %v1344_v11 = vpop.xlane.xlu1 %1343 }
 0xc05   :  { %v1346_v12 = vmul.f32 0.03125, %v1344_v11  ;;  %v1341_v13 = vpop.xlane.xlu0 %1340 }
 0xc06   :  { %v1345_v14 = vmul.f32 0.03125, %v1341_v13 }
 0xc07   :  { %v1348_v1 = vsub.f32 %v2331_v7, %v1346_v12 }
 0xc08   :  { %v1347_v0 = vsub.f32 %v2333_v8, %v1345_v14 }
 0xc09   :  { %v1350_v17 = vmul.f32 %v1348_v1, %v1348_v1 }
 0xc0a   :  { %v1349_v15 = vmul.f32 %v1347_v0, %v1347_v0 }
 0xc0b   :  { %v1354_v18 = vsel %vm54_vm0, %v1350_v17, 0.0 }
 0xc0c   :  { %v1351_v16 = vsel %vm54_vm0, %v1349_v15, 0.0 }
 0xc0d   :  { %1352 = vadd.xlane.f32.xlu0 %v1351_v16 }
 0xc11   :  { %1355 = vadd.xlane.f32.xlu0 %v1354_v18 }
 0xc9a   :  { %v1353_v27 = vpop.xlane.xlu0 %1352 }
 0xc9b   :  { %v1357_v51 = vmul.f32 0.03125, %v1353_v27 }
 0xc9d   :  { %v1359_v28 = vadd.f32 1e-05, %v1357_v51 }
 0xc9e   :  { %v1356_v29 = vpop.xlane.xlu0 %1355 }
 0xc9f   :  { %2044 = vrsqrt.f32 %v1359_v28  ;;  %v1358_v30 = vmul.f32 0.03125, %v1356_v29 }
 0xca1   :  { %v1360_v31 = vadd.f32 1e-05, %v1358_v30 }
 0xca3   :  { %2046 = vrsqrt.f32 %v1360_v31 }
 0xca9   :  { %v2045_v32 = vpop.eup %2044 }
 0xcaa   :  { %v1363_v34 = vmul.f32 %v2045_v32, %v1347_v0 }
 0xcac   :  { %v1371_v36 = vmul.f32 %v1647_v33, %v1363_v34 }
 0xcad   :  { %v2047_v37 = vpop.eup %2046 }
 0xcae   :  { %v1364_v38 = vmul.f32 %v2047_v37, %v1348_v1  ;;  %v1379_v39 = vadd.f32 %v1648_v35, %v1371_v36 }
 0xcb0   :  { %v1372_v40 = vmul.f32 %v1647_v33, %v1364_v38  ;;  %1822 = vmatprep.mubr.msk.f32.mxu1 %vm54_vm0, %v1379_v39 }
 0xcb2   :  { %v1380_v44 = vadd.f32 %v1648_v35, %v1372_v40 }
 0xcb4   :  { %1823 = vmatmul.mubr.msk.f32.vlgmr.msra.gmra.mrb[14].mxu1 %vm54_vm0, %v1380_v44 }
 0xd87   :  { %v1824_v5 = vpop.f32.mrb[14].mxu1 }
 0xd88   :  { %v1470_v6 = vadd.f32 %v1824_v5, %v1649_v4  ;;  %v1464_v47 = vpop.f32.mrb[15].mxu1 }
 0xd89   :  { %v1465_v9 = vadd.f32 %v1649_v4, %v1464_v47 }
 0xd8a   :  { %v1476_v10 = vmul.f32 0.044715, %v1470_v6  ;;  %v1474_v23 = vmul.f32 0.5, %v1470_v6 }
 0xd8b   :  { %v1475_v11 = vmul.f32 0.044715, %v1465_v9  ;;  %v1473_v21 = vmul.f32 0.5, %v1465_v9 }
 0xd8c   :  { %v1478_v12 = vmul.f32 %v1476_v10, %v1470_v6 }
 0xd8d   :  { %v1477_v13 = vmul.f32 %v1475_v11, %v1465_v9 }
 0xd8e   :  { %v1480_v14 = vmul.f32 %v1478_v12, %v1470_v6 }
 0xd8f   :  { %v1479_v1 = vmul.f32 %v1477_v13, %v1465_v9 }
 0xd90   :  { %v1482_v0 = vadd.f32 %v1480_v14, %v1470_v6 }
 0xd91   :  { %v1481_v15 = vadd.f32 %v1479_v1, %v1465_v9 }
 0xd92   :  { %v1484_v16 = vmul.f32 0.7978846, %v1482_v0 }
 0xd93   :  { %v1483_v17 = vmul.f32 0.7978846, %v1481_v15 }
 0xd94   :  { %2048 = vtanh.f32 %v1484_v16 }
 0xd95   :  { %2050 = vtanh.f32 %v1483_v17 }
 0xd9e   :  { %v2049_v18 = vpop.eup %2048 }
 0xd9f   :  { %v2051_v19 = vpop.eup %2050  ;;  %v1488_v20 = vadd.f32 1.0, %v2049_v18 }
 0xda0   :  { %v1487_v22 = vadd.f32 1.0, %v2051_v19 }
 0xda1   :  { %v1490_v25 = vmul.f32 %v1488_v20, %v1474_v23 }
 0xda2   :  { %v1489_v24 = vmul.f32 %v1487_v22, %v1473_v21 }
 0xda4   :  { %1857 = vmatprep.mubr.f32.mxu0 %v1489_v24 }
 0xda5   :  { %1858 = vmatmul.mubr.f32.vlgmr.msra.gmra.mrb[6].mxu0 %v1490_v25 }
 0xe78   :  { %v1859_v49 = vpop.f32.mrb[6].mxu0 }
 0xe79   :  { %v1586_v27 = vadd.f32 %v1859_v49, %v1652_v26  ;;  %v1580_v51 = vpop.f32.mrb[7].mxu0 }
 0xe7a   :  { %v1581_v28 = vadd.f32 %v1652_v26, %v1580_v51 }
 0xe7b   :  { %v1590_v29 = vadd.f32 %v1586_v27, %v2331_v7 }
 0xe7c   :  { %v1589_v30 = vadd.f32 %v1581_v28, %v2333_v8 }
 0xe7d   :  { %1592 = vst.msk [vmem:[#allocation2 + $0x8] sm:$0xff] %vm54_vm0, %v1590_v29 }
 0xe7e   :  { %1591 = vst.msk [vmem:[#allocation2] sm:$0xff] %vm54_vm0, %v1589_v30 }
 0xe7f   :  { %2063 = shalt.err (!%p2060_p4)
}
 0xe80   :  { %s2064_s28 = scalar_lea.hbm %s2447_s14, 256 }
 0xe81   :  { %p2065_p5 = scmp.ne.s32.totalorder %s2447_s14, %s2064_s28  ;;  %p2068_p6 = scmp.lt.u32.totalorder %s2064_s28, %s2447_s14 }
 0xe83   :  { %p2070_p7 = pnand %p2068_p6, %p2065_p5 }
 0xe85   :  { %2073 = shalt.err (!%p2070_p7)
}
 0xe86   :  { %s2088_s7 = smov 128   ;;  %s2089_s5 = smov 8  }
 0xe87   :  { %1604 = dma.vmem_to_hbm [thread:$0]  %s1599_s9, 256, %s2447_s14, [#allocation3], %s2088_s7, %s2088_s7, %s2089_s5  }
 0xe88   :  { %2074 = dma.done.wait [#allocation3], 256  }
 0xe89   :  { %2075 = vsyncadd [#allocation3], 4294967040 }
 0xe8a   :  { %1608 = vsyncpa [#allocation3], 1 }

</bundles_post_ra>
